<compile_context>
chip_gen: v6e
topology: v6e:2x2x1
jax: 0.10.0
libtpu: 0.0.40
codegen_flags: <defaults>
</compile_context>

<pallas_src>
import jax
import jax.numpy as jnp
from jax.experimental import pallas as pl
from jax.experimental.pallas import tpu as pltpu


def _mul_bcast_kernel(x_ref, y_ref, o_ref):
    # x tile: (3, TR, L); y tile: (TR, L) -> multiply every repeat slab by y.
    o_ref[...] = (x_ref[...] * y_ref[...][None]).astype(o_ref.dtype)


def _vmem_plan():
    """Returns (target bytes for one (TR, L) y-chunk, vmem_limit_bytes)."""
    try:
        phys = int(getattr(pltpu.get_tpu_info(), "vmem_capacity_bytes", 0)) or (64 << 20)
    except Exception:
        phys = 64 << 20                              # conservative: v7x per-core VMEM
    vmem_limit = min((phys * 3) // 4, 96 << 20)      # v7x: 48 MiB, v5e/v6e: 96 MiB
    # Working set ~= 2 (double buffer) x (3 + 1 + 3) = 14 chunks; /16 leaves headroom.
    chunk_bytes = min(4 << 20, vmem_limit // 16)
    return chunk_bytes, vmem_limit


def _pick_lane_tile(S):
    """Largest lane width (multiple of 128) dividing S, preferring >= 8 rows."""
    for L in (512, 256, 128):
        if S % L == 0 and (S // L) >= 8:
            return L
    if S % 128 == 0:
        return 128
    return None


def _pick_row_tile(R, L, itemsize, chunk_bytes, min_chunks):
    """Row (sublane) tile: multiple of the sublane packing, ~chunk_bytes per (TR, L)
    y-chunk.  No exact-divisor requirement: the grid uses pl.cdiv (ragged tail)."""
    sub = {4: 8, 2: 16, 1: 32}.get(itemsize, 8)
    if R <= sub:
        return R                                  # full extent (legal even if R % 8 != 0)
    row_bytes = L * itemsize
    tr = max(sub, (chunk_bytes // row_bytes) // sub * sub)
    tr = min(tr, (R // sub) * sub)
    # Keep enough parallel steps to feed both v7x TensorCores, but never shrink a
    # chunk below the ~512 KiB DMA-efficiency knee.
    knee = max(sub, ((512 << 10) // row_bytes) // sub * sub)
    if pl.cdiv(R, tr) < min_chunks:
        want = pl.cdiv(pl.cdiv(R, min_chunks), sub) * sub
        tr = max(min(tr, want), knee, sub)
    return tr


def multiply_layer1(x, y):
    """x: (N, 3*C, H, W), y: (N, C, H, W)  ->  x * concat([y, y, y], axis=1)."""
    N, C3, H, W = x.shape
    Ny, C, Hy, Wy = y.shape
    assert N == Ny and H == Hy and W == Wy and C3 == 3 * C, "shape mismatch"

    out_dtype = jnp.result_type(x.dtype, y.dtype)
    itemsize = max(jnp.dtype(x.dtype).itemsize, jnp.dtype(y.dtype).itemsize,
                   jnp.dtype(out_dtype).itemsize)
    S = C * H * W
    chunk_bytes, vmem_limit = _vmem_plan()

    cost = pl.CostEstimate(
        flops=3 * N * S,
        transcendentals=0,
        bytes_accessed=N * S * (3 * jnp.dtype(x.dtype).itemsize
                                + jnp.dtype(y.dtype).itemsize
                                + 3 * jnp.dtype(out_dtype).itemsize),
    )

    L = _pick_lane_tile(S)
    if L is not None:
        # Main path: lane-dense flat view (N, 3, R, L); contiguous row-major reshape
        # is free.  Repeat axis lives inside the block (x tile = (3, TR, L)).
        R = S // L
        min_chunks = pl.cdiv(8, N)                 # aim for >= ~8 parallel grid steps
        TR = _pick_row_tile(R, L, itemsize, chunk_bytes, min_chunks)
        n_chunks = pl.cdiv(R, TR)

        x_flat = x.reshape(N, 3, R, L)
        y_flat = y.reshape(N, R, L)

        out = pl.pallas_call(
            _mul_bcast_kernel,
            out_shape=jax.ShapeDtypeStruct((N, 3, R, L), out_dtype),
            grid_spec=pltpu.PrefetchScalarGridSpec(
                num_scalar_prefetch=0,
                grid=(N, n_chunks),
                in_specs=[
                    pl.BlockSpec((None, 3, TR, L), lambda n, c: (n, 0, c, 0)),
                    pl.BlockSpec((None, TR, L), lambda n, c: (n, c, 0)),
                ],
                out_specs=pl.BlockSpec((None, 3, TR, L), lambda n, c: (n, 0, c, 0)),
            ),
            compiler_params=pltpu.CompilerParams(
                dimension_semantics=("parallel", "parallel"),
                vmem_limit_bytes=vmem_limit,
            ),
            cost_estimate=cost,
        )(x_flat, y_flat)
        return out.reshape(N, C3, H, W)

    # Fallback (S not a multiple of 128): view as (N, 3, C, H*W) so the flattened
    # spatial dim stays lane-major (dense except one ragged tail) and tile C / H*W
    # to keep the double-buffered working set bounded (v7x has only 64 MiB VMEM).
    HW = H * W
    x_v = x.reshape(N, 3, C, HW)
    y_v = y.reshape(N, C, HW)

    if HW >= 256 and HW * itemsize > chunk_bytes:
        THW = max(128, ((chunk_bytes // itemsize) // 128) * 128)
    else:
        THW = HW                                   # full extent: legal even if HW % 128 != 0
    row_bytes = THW * itemsize
    if C <= 8:
        TC = C                                     # full extent: legal even if C % 8 != 0
    else:
        TC = max(8, min((chunk_bytes // row_bytes) // 8 * 8, (C // 8) * 8))

    out = pl.pallas_call(
        _mul_bcast_kernel,
        out_shape=jax.ShapeDtypeStruct((N, 3, C, HW), out_dtype),
        grid_spec=pltpu.PrefetchScalarGridSpec(
            num_scalar_prefetch=0,
            grid=(N, pl.cdiv(C, TC), pl.cdiv(HW, THW)),
            in_specs=[
                pl.BlockSpec((None, 3, TC, THW), lambda n, c, h: (n, 0, c, h)),
                pl.BlockSpec((None, TC, THW), lambda n, c, h: (n, c, h)),
            ],
            out_specs=pl.BlockSpec((None, 3, TC, THW), lambda n, c, h: (n, 0, c, h)),
        ),
        compiler_params=pltpu.CompilerParams(
            dimension_semantics=("parallel", "parallel", "parallel"),
            vmem_limit_bytes=vmem_limit,
        ),
        cost_estimate=cost,
    )(x_v, y_v)
    return out.reshape(N, C3, H, W)


if __name__ == "__main__":
    key = jax.random.PRNGKey(0)
    kx, ky = jax.random.split(key)

    N, C, H, W = 2, 4, 16, 16
    x = jax.random.normal(kx, (N, 3 * C, H, W), dtype=jnp.float32)
    y = jax.random.normal(ky, (N, C, H, W), dtype=jnp.float32)

    out = multiply_layer1(x, y)
    out = jax.block_until_ready(out)

    # Reference (plain JAX) check of the PyTorch semantics.
    ref = x * jnp.concatenate([y, y, y], axis=1)
    assert out.shape == ref.shape and out.dtype == ref.dtype
    assert jnp.allclose(out, ref, atol=1e-6, rtol=1e-6)

    print("KERNEL_OK")
</pallas_src>

<mosaic_0001>
module attributes {stable_mosaic.version = 11 : i64} {
  func.func @_mul_bcast_kernel(%arg0: i32, %arg1: i32, %arg2: memref<1x3x8x128xf32, #tpu.memory_space<vmem>>, %arg3: memref<1x8x128xf32, #tpu.memory_space<vmem>>, %arg4: memref<1x3x8x128xf32, #tpu.memory_space<vmem>>) attributes {dimension_semantics = [#tpu.dimension_semantics<parallel>, #tpu.dimension_semantics<parallel>], iteration_bounds = array<i64: 2, 1>, scalar_prefetch = 0 : i64, scratch_operands = 0 : i64, tpu.core_type = #tpu.core_type<tc>, window_params = [{transform_indices = @transform_0, window_bounds = array<i64: 1, 3, 8, 128>}, {transform_indices = @transform_1, window_bounds = array<i64: 1, 8, 128>}, {transform_indices = @transform_2, window_bounds = array<i64: 1, 3, 8, 128>}]} {
    %c0 = arith.constant 0 : index
    %c0_0 = arith.constant 0 : index
    %c0_1 = arith.constant 0 : index
    %c0_2 = arith.constant 0 : index
    %0 = vector.load %arg2[%c0, %c0_0, %c0_1, %c0_2] : memref<1x3x8x128xf32, #tpu.memory_space<vmem>>, vector<1x3x8x128xf32>
    %1 = vector.shape_cast %0 : vector<1x3x8x128xf32> to vector<3x8x128xf32>
    %c0_3 = arith.constant 0 : index
    %c0_4 = arith.constant 0 : index
    %c0_5 = arith.constant 0 : index
    %2 = vector.load %arg3[%c0_3, %c0_4, %c0_5] : memref<1x8x128xf32, #tpu.memory_space<vmem>>, vector<1x8x128xf32>
    %3 = vector.shape_cast %2 : vector<1x8x128xf32> to vector<8x128xf32>
    %4 = vector.shape_cast %3 : vector<8x128xf32> to vector<1x8x128xf32>
    %5 = vector.broadcast %4 : vector<1x8x128xf32> to vector<3x8x128xf32>
    %6 = arith.mulf %1, %5 : vector<3x8x128xf32>
    %c0_6 = arith.constant 0 : index
    %c0_7 = arith.constant 0 : index
    %c0_8 = arith.constant 0 : index
    %c0_9 = arith.constant 0 : index
    %7 = vector.load %arg4[%c0_6, %c0_7, %c0_8, %c0_9] : memref<1x3x8x128xf32, #tpu.memory_space<vmem>>, vector<1x3x8x128xf32>
    %8 = vector.shape_cast %7 : vector<1x3x8x128xf32> to vector<3x8x128xf32>
    %9 = vector.shape_cast %6 : vector<3x8x128xf32> to vector<1x3x8x128xf32>
    tpu.vector_store %arg4[%c0_6, %c0_7, %c0_8, %c0_9], %9 {strides = array<i32>} : memref<1x3x8x128xf32, #tpu.memory_space<vmem>>, vector<1x3x8x128xf32>,
    return
  }
  func.func @transform_0(%arg0: i32, %arg1: i32) -> (i32, i32, i32, i32) {
    %c0_i32 = arith.constant 0 : i32
    %c0_i32_0 = arith.constant 0 : i32
    %c0_i32_1 = arith.constant 0 : i32
    return %arg0, %c0_i32, %arg1, %c0_i32_0 : i32, i32, i32, i32
  }
  func.func @transform_1(%arg0: i32, %arg1: i32) -> (i32, i32, i32) {
    %c0_i32 = arith.constant 0 : i32
    %c0_i32_0 = arith.constant 0 : i32
    return %arg0, %arg1, %c0_i32 : i32, i32, i32
  }
  func.func @transform_2(%arg0: i32, %arg1: i32) -> (i32, i32, i32, i32) {
    %c0_i32 = arith.constant 0 : i32
    %c0_i32_0 = arith.constant 0 : i32
    %c0_i32_1 = arith.constant 0 : i32
    return %arg0, %c0_i32, %arg1, %c0_i32_0 : i32, i32, i32, i32
  }
}

</mosaic_0001>

<bundles_post_ra>
// kernel: tpu_custom_call.1
= control target key start
LH: loop header
LB: loop body
LE: loop exit
PB: predicated region body
PF: predicated region fallthrough
CT: control target
= control target key end

     0   :  { %7 = vsyncpa [#allocation3], 0  ;;  %s780_s0 = inlined_call_operand.hbm [shape: f32[2,3,8,128], index: 0, kind: input, shape index: {}]   ;;  %s781_s1 = inlined_call_operand.hbm [shape: f32[2,8,128], index: 1, kind: input, shape index: {}]   ;;  %s782_s2 = inlined_call_operand.hbm [shape: f32[2,3,8,128], index: 2, kind: output, shape index: {}]  }
   0x1   :  { %9 = vsyncpa [#allocation3 + $0x1], 0 }
   0x2   :  { %10 = vsyncpa [#allocation6], 0 }
   0x3   :  { %12 = vsyncpa [#allocation6 + $0x1], 0 }
   0x4   :  { %13 = vsyncpa [#allocation4], 0 }
   0x5   :  { %15 = vsyncpa [#allocation4 + $0x1], 0  ;;  %s604_s9 = smov 0   ;;  %s606_s10 = smov 0  }
   0x6   :  { %s608_s11 = smov 0   ;;  %s610_s12 = smov 0  }
   0x7   :  { %s612_s13 = smov 0   ;;  %s614_s14 = smov 0  }
   0x8 LB: > { %s353_s15 = sadd.s32 4294967295, %s580_s14   ;;  %s354_s16 = sadd.s32 4294967294, %s580_s14   ;;  %s580_s14 = sphi %s614_s14, %s21_s14   ;;  %s576_s13 = sphi %s612_s13, %s793_s13   ;;  %s572_s12 = sphi %s610_s12, %s792_s12   ;;  %s568_s11 = sphi %s608_s11, %s791_s11   ;;  %s564_s10 = sphi %s606_s10, %s790_s10   ;;  %s560_s9 = sphi %s604_s9, %s789_s9  }
   0x9   : > { %s33_s17 = sadd.s32 1, %s576_s13  ;;  %s42_s18 = sadd.s32 1, %s568_s11 }
   0xa   : > { %p35_p0 = scmp.ge.s32.totalorder %s33_s17, 2  ;;  %p49_p1 = scmp.ne.s32.totalorder %s568_s11, %s564_s10 }
   0xb   : > { %p50_p2 = scmp.eq.s32.totalorder %s580_s14, 0  ;;  %p55_p3 = scmp.ne.s32.totalorder %s564_s10, %s560_s9 }
   0xc   : > { %s795_s17 = smov (%p35_p0, %s33_s17), 0  ;;  %p56_p5 = scmp.eq.s32.totalorder %s353_s15, 0 }
   0xd   : > { %p645_p4 = por %p50_p2, %p49_p1  ;;  %s37_s20 = ssub.s32 %s576_s13, %s795_s17 }
   0xe   : > { %p109_p6 = scmp.eq.s32.totalorder %s353_s15, 1  ;;  %p40_p7 = scmp.eq.s32.totalorder %s37_s20, 0 }
   0xf   : > { %p651_p8 = por %p56_p5, %p55_p3  ;;  %p115_p10 = scmp.eq.s32.totalorder %s354_s16, 1 }
  0x10   : > { %p655_p9 = por %p109_p6, %p49_p1  ;;  %p356_p12 = scmp.ge.s32.totalorder %s580_s14, 2 }
  0x11   : > { %s660_s23 = scalar_select %p40_p7, %s568_s11, %s42_s18  }
  0x12   : > { %p662_p11 = por %p115_p10, %p55_p3  ;;  %p386_p13 = scmp.lt.s32.totalorder %s580_s14, 2 }
  0x13   : > { %s669_s25 = sand.u32 1, %s568_s11   ;;  %s366_s27 = smul.u32 384, %s576_s13 }
  0x14   : > { %s365_s26 = smul.u32 24, %s669_s25  ;;  %p675_p0 = pnand %p386_p13, %p645_p4 }
  0x15   : > { %s146_s3 = scalar_lea.hbm %s780_s0, %s366_s27  ;;  %p360_p1 = scmp.ge.s32.totalorder %s580_s14, 1 }
  0x16   : > { %s139_s4 = scalar_lea.vmem [#allocation2], %s365_s26  ;;  %s136_s6 = scalar_lea.sflag [#allocation3], %s669_s25 }
  0x17   : > { %s147_s5 = sshll.u32 %s139_s4, 4  ;;  %p442_p2 = pneg %p675_p0  ;;  %s148_s5 = int_to_ptr.vmem [resolvable:$true] %s147_s5 }
  0x18   : > { %s453_s7 = scalar_lea.vmem %s148_s5, 384  ;;  %s582_s8 = smov [#allocation2]  }
  0x19   : > { %p454_p3 = scmp.ne.s32.totalorder %s148_s5, %s453_s7  ;;  %s458_s15 = sshll.u32 %s582_s8, 4  ;;  %s459_s15 = int_to_ptr.vmem [resolvable:$false] %s458_s15 }
  0x1a   : > { %s460_s16 = scalar_lea.vmem %s459_s15, 768  ;;  %p461_p6 = scmp.lt.s32.totalorder %s148_s5, %s459_s15 }
  0x1b   : > { %p456_p4 = pnand %p454_p3, %p442_p2  ;;  %p462_p7 = scmp.lt.s32.totalorder %s460_s16, %s453_s7 }
  0x1d   : > { %p457_p5 = pneg %p456_p4  ;;  %p463_p10 = por %p462_p7, %p461_p6 }
  0x1f   : > { %p464_p13 = pnand %p463_p10, %p457_p5 }
  0x21   : > { %467 = shalt.err (!%p464_p13)
}
  0x22   : > { %s583_s18 = smov 128   ;;  %s584_s19 = smov 8  }
  0x23   : > { %378 = dma.hbm_to_vmem [thread:$0]  (!%p675_p0), %s146_s3, 384, %s148_s5, %s136_s6, %s583_s18, %s583_s18, %s584_s19  }
  0x24   : > { %p174_p3 = scmp.lt.s32.totalorder %s580_s14, 3  ;;  %s358_s20 = sshll.u32 %s669_s25, 3 }
  0x25   : > { %s359_s26 = sshll.u32 %s576_s13, 7  ;;  %s161_s7 = scalar_lea.vmem [#allocation5], %s358_s20 }
  0x26   : > { %p696_p4 = pnand %p360_p1, %p174_p3  ;;  %s167_s4 = scalar_lea.hbm %s781_s1, %s359_s26 }
  0x27   : > { %s169_s8 = sshll.u32 %s161_s7, 4  ;;  %s158_s15 = scalar_lea.sflag [#allocation6], %s669_s25  ;;  %s170_s8 = int_to_ptr.vmem [resolvable:$true] %s169_s8 }
  0x28   : > { %s481_s16 = scalar_lea.vmem %s170_s8, 128  ;;  %s585_s3 = smov [#allocation5]  }
  0x29   : > { %p482_p5 = scmp.ne.s32.totalorder %s170_s8, %s481_s16  ;;  %s486_s5 = sshll.u32 %s585_s3, 4  ;;  %s487_s5 = int_to_ptr.vmem [resolvable:$false] %s486_s5 }
  0x2a   : > { %s488_s6 = scalar_lea.vmem %s487_s5, 256  ;;  %p489_p1 = scmp.lt.s32.totalorder %s170_s8, %s487_s5 }
  0x2b   : > { %p484_p6 = pnand %p482_p5, %p442_p2  ;;  %p490_p10 = scmp.lt.s32.totalorder %s488_s6, %s481_s16 }
  0x2d   : > { %p485_p7 = pneg %p484_p6  ;;  %p491_p13 = por %p490_p10, %p489_p1 }
  0x2f   : > { %p492_p3 = pnand %p491_p13, %p485_p7 }
  0x31   : > { %495 = shalt.err (!%p492_p3)
}
  0x32   : > { %381 = dma.hbm_to_vmem [thread:$0]  (!%p675_p0), %s167_s4, 128, %s170_s8, %s158_s15  }
  0x33   : > { %178 = sbr.rel (%p696_p4) target bundleno = 85 (0x55), region = 28  ;;  %s712_s25 = sand.u32 (!%p696_p4), 1, %s564_s10  }
  0x34   : > { %s367_s18 = smul.u32 (!%p696_p4), 24, %s712_s25  ;;  %s181_s19 = scalar_lea.sflag (!%p696_p4), [#allocation3], %s712_s25 }
  0x36   : > { %s184_s20 = scalar_lea.vmem (!%p696_p4), [#allocation2], %s367_s18 }
  0x38   : > { %547 = dma.done.wait (%p651_p8), %s181_s19, 384  }
  0x39   : > { %549 = vsyncadd (%p651_p8), %s181_s19, 4294966912  ;;  %s361_s28 = sshll.u32 %s712_s25, 3  ;;  %s190_s26 = scalar_lea.sflag [#allocation6], %s712_s25 }
  0x3a   : > { %s193_s27 = scalar_lea.vmem [#allocation5], %s361_s28 }
  0x3b   : > { %551 = dma.done.wait (%p651_p8), %s190_s26, 128  }
  0x3c   : > { %553 = vsyncadd (%p651_p8), %s190_s26, 4294967168  ;;  %s218_s29 = scalar_lea.vmem [#allocation7], %s367_s18  ;;  %s368_s4 = smul.u32 384, %s572_s12  ;;  %v219_v0 = vld [vmem:[%s184_s20] sm:$0xff]  ;;  %v220_v2 = vld [vmem:[%s184_s20 + $0x8] sm:$0xff] }
  0x3d   : > { %s244_s30 = sshll.u32 %s218_s29, 4  ;;  %v222_v1 = vld [vmem:[%s193_s27] sm:$0xff]  ;;  %s230_s12 = scalar_lea.sflag [#allocation4], %s712_s25  ;;  %s727_s30 = int_to_ptr.vmem [resolvable:$true] %s244_s30 }
  0x3e   : > { %v223_v3 = vmul.f32 %v222_v1, %v219_v0  ;;  %v224_v4 = vmul.f32 %v222_v1, %v220_v2  ;;  %v221_v5 = vld [vmem:[%s184_s20 + $0x10] sm:$0xff]  ;;  %s732_s8 = scalar_lea.hbm %s782_s2, %s368_s4  ;;  %s496_s15 = scalar_lea.vmem %s727_s30, 384 }
  0x3f   : > { %v225_v6 = vmul.f32 %v222_v1, %v221_v5  ;;  %p497_p8 = scmp.ne.s32.totalorder %s727_s30, %s496_s15  ;;  %s586_s16 = smov [#allocation7]  }
  0x40   : > { %226 = vst [vmem:[%s218_s29] sm:$0xff] %v223_v3  ;;  %227 = vst [vmem:[%s218_s29 + $0x8] sm:$0xff] %v224_v4  ;;  %s500_s3 = sshll.u32 %s586_s16, 4  ;;  %s501_s3 = int_to_ptr.vmem [resolvable:$false] %s500_s3 }
  0x41   : > { %228 = vst [vmem:[%s218_s29 + $0x10] sm:$0xff] %v225_v6  ;;  %p498_p0 = pnand %p497_p8, %p655_p9  ;;  %s502_s5 = scalar_lea.vmem %s501_s3, 768 }
  0x42   : > { %p503_p4 = scmp.lt.s32.totalorder %s727_s30, %s501_s3  ;;  %p504_p5 = scmp.lt.s32.totalorder %s502_s5, %s496_s15 }
  0x43   : > { %p499_p2 = pneg %p498_p0 }
  0x44   : > { %p505_p6 = por %p504_p5, %p503_p4 }
  0x46   : > { %p506_p7 = pnand %p505_p6, %p499_p2 }
  0x48   : > { %509 = shalt.err (!%p506_p7)
}
  0x49   : > { %s510_s6 = scalar_lea.hbm %s732_s8, 384  ;;  %s514_s20 = scalar_lea.hbm %s782_s2, 768 }
  0x4a   : > { %p511_p1 = scmp.ne.s32.totalorder %s732_s8, %s510_s6  ;;  %p515_p3 = scmp.lt.s32.totalorder %s732_s8, %s782_s2 }
  0x4b   : > { %p516_p8 = scmp.lt.s32.totalorder %s514_s20, %s510_s6 }
  0x4c   : > { %p512_p10 = pnand %p511_p1, %p655_p9 }
  0x4d   : > { %p517_p0 = por %p516_p8, %p515_p3 }
  0x4e   : > { %p513_p13 = pneg %p512_p10 }
  0x50   : > { %p518_p2 = pnand %p517_p0, %p513_p13 }
  0x52   : > { %521 = shalt.err (!%p518_p2)
}
  0x53   : > { %s587_s27 = smov 128   ;;  %s588_s29 = smov 8  }
  0x54   : > { %373 = dma.vmem_to_hbm [thread:$0]  (%p655_p9), %s727_s30, 384, %s732_s8, %s230_s12, %s587_s27, %s587_s27, %s588_s29  }
  0x55 PF: > { %s259_s4 = sand.u32 1, %s560_s9   ;;  %p383_p4 = pnand %p356_p12, %p662_p11 }
  0x56   : > { %s260_s21 = scalar_lea.sflag [#allocation4], %s259_s4 }
  0x57   : > { %p384_p5 = pneg %p383_p4 }
  0x59   : > { %555 = dma.done.wait (%p384_p5), %s260_s21, 384  }
  0x5a   : > { %557 = vsyncadd (%p384_p5), %s260_s21, 4294966912  ;;  %s21_s14 = sadd.s32 1, %s580_s14   ;;  %s789_s9 = smov %s564_s10 }
  0x5b   : > { %p18_p6 = scmp.ge.s32.totalorder %s21_s14, 4   ;;  %s790_s10 = smov %s568_s11 }
  0x5c   : > { %s791_s11 = smov %s660_s23  ;;  %s792_s12 = smov %s576_s13 }
  0x5d   : > { %s793_s13 = smov %s795_s17  ;;  %20 = sbr.rel (!%p18_p6) target bundleno = 8 (0x8), region = 86 }
  0x62   :  { %265 = vsyncpa [#allocation3], 1 }
  0x63   :  { %267 = vsyncpa [#allocation3 + $0x1], 1 }
  0x64   :  { %268 = vsyncpa [#allocation6], 1 }
  0x65   :  { %270 = vsyncpa [#allocation6 + $0x1], 1 }
  0x66   :  { %271 = vsyncpa [#allocation4], 1 }
  0x67   :  { %273 = vsyncpa [#allocation4 + $0x1], 1 }

</bundles_post_ra>
